<compile_context>
chip_gen: v7x
topology: tpu7x:2x2x1
jax: 0.10.0
libtpu: 0.0.40
codegen_flags: <defaults>
</compile_context>

<pallas_src>
import jax
import jax.numpy as jnp
from jax.experimental import pallas as pl
from jax.experimental.pallas import tpu as pltpu

WEIGHT_BCE = 0.75
WEIGHT_DICE = 0.25
SMOOTH = 1.0

_SUB = 8      # f32 sublanes per vreg
_LANE = 128   # lanes per vreg
_CHUNK = _SUB * _LANE  # elements per (8,128) slab
_LOGIT_PAD = -30.0     # sigmoid / log1p(exp(.)) of the pad is ~1e-13: contributes nothing


def _kernel(x_ref, y_ref, out_ref):
    # x_ref, y_ref: (C, tile_g, 8, 128) native dtype; out_ref: (4, C, 8, 128) f32
    t = pl.program_id(2)

    @pl.when(t == 0)
    def _init():
        out_ref[...] = jnp.zeros(out_ref.shape, out_ref.dtype)

    x = x_ref[...].astype(jnp.float32)
    y = y_ref[...].astype(jnp.float32)

    # One exp per element, shared by the stable BCE (log1p) and the sigmoid.
    e = jnp.exp(-jnp.abs(x))
    bce = jnp.maximum(x, 0.0) - x * y + jnp.log1p(e)
    inv = pl.reciprocal(1.0 + e, approx=True)      # EUP slot; VALU stays free
    s = jnp.where(x >= 0.0, inv, e * inv)          # numerically stable sigmoid(x)

    sy = s * y
    tp = sy * sy                                    # (s * y)^2
    fp = (s - sy) ** 2                              # (s * (1 - y))^2
    fn = (y - sy) ** 2                              # ((1 - s) * y)^2

    # Partial-reduce only over the tile_g axis (pure vreg adds, no XLU); the
    # (8,128) lane/sublane + cross-batch/split fold happens once on the host.
    out_ref[0] += jnp.sum(bce, axis=1)
    out_ref[1] += jnp.sum(tp, axis=1)
    out_ref[2] += jnp.sum(fp, axis=1)
    out_ref[3] += jnp.sum(fn, axis=1)


def bce_and_dice(logits_nchw, target_nchw):
    """0.75*BCEWithLogits + 0.25*SoftDice(sigmoid, batch_dice=True, square=True).

    Inputs are (B, C, H, W) in their native dtype (no host transpose / upcast)."""
    B, C, H, W = logits_nchw.shape
    HW = H * W

    itemsize = max(jnp.dtype(logits_nchw.dtype).itemsize,
                   jnp.dtype(target_nchw.dtype).itemsize)
    # ~4 MiB per input block: 2 inputs x 2 pipeline buffers = 16 MiB, comfortably
    # inside the explicit 32 MiB scoped-VMEM limit below on every generation, and
    # big enough to amortize the ~0.35 us per-grid-step overhead.
    budget_bytes = 4 * 1024 * 1024
    g_needed = pl.cdiv(HW, _CHUNK)
    tile_g = max(1, min(budget_bytes // (C * _CHUNK * itemsize), g_needed))
    num_tiles = pl.cdiv(g_needed, tile_g)
    # Split each batch's tile chain into two independent "parallel" segments so both
    # v7x TensorCores are busy even when B == 1 (harmless on 1-TC v5e/v6e).
    n_split = 2 if num_tiles >= 2 else 1
    tiles_per_split = pl.cdiv(num_tiles, n_split)
    g_pad = n_split * tiles_per_split * tile_g
    s_pad = g_pad * _CHUNK

    def _prep(a, pad_value):
        a3 = a.reshape(B, C, HW)                 # contiguous reshape, no transpose
        if s_pad != HW:
            # TODO(synk): this pad materializes one extra pass over the input; pad
            # H*W to a multiple of 1024 upstream in the data pipeline to always hit
            # the zero-copy path on HBM-bound v5e/v6e.
            a3 = jnp.pad(a3, ((0, 0), (0, 0), (0, s_pad - HW)),
                         constant_values=pad_value)
        return a3.reshape(B, C, g_pad, _SUB, _LANE)

    xp = _prep(logits_nchw, _LOGIT_PAD)  # very negative logit pad -> no in-kernel mask
    yp = _prep(target_nchw, 0.0)

    total = B * C * s_pad
    in_bytes = total * (jnp.dtype(xp.dtype).itemsize + jnp.dtype(yp.dtype).itemsize)
    cost = pl.CostEstimate(
        flops=30 * total,
        transcendentals=3 * total,               # exp, log1p, reciprocal
        bytes_accessed=in_bytes + (in_bytes if s_pad != HW else 0)
                       + B * n_split * 4 * C * _CHUNK * 4,
    )

    in_spec = pl.BlockSpec((None, C, tile_g, _SUB, _LANE),
                           lambda b, p, t: (b, 0, p * tiles_per_split + t, 0, 0))
    parts = pl.pallas_call(
        _kernel,
        out_shape=jax.ShapeDtypeStruct((B, n_split, 4, C, _SUB, _LANE), jnp.float32),
        grid_spec=pltpu.PrefetchScalarGridSpec(
            num_scalar_prefetch=0,
            grid=(B, n_split, tiles_per_split),
            in_specs=[in_spec, in_spec],
            out_specs=pl.BlockSpec((None, None, 4, C, _SUB, _LANE),
                                   lambda b, p, t: (b, p, 0, 0, 0, 0)),
        ),
        compiler_params=pltpu.CompilerParams(
            dimension_semantics=("parallel", "parallel", "arbitrary"),
            vmem_limit_bytes=32 * 1024 * 1024),
        cost_estimate=cost,
    )(xp, yp)

    # Tiny host-side finalize: fold batch/split/lanes/sublanes, then scalar combine.
    sums = jnp.sum(parts, axis=(0, 1, 4, 5))               # (4, C)
    bce_mean = jnp.sum(sums[0]) / jnp.float32(B * C * HW)  # BCEWithLogits mean
    tp, fp, fn = sums[1], sums[2], sums[3]                 # per-channel (batch dice)
    dc = (2.0 * tp + SMOOTH) / (2.0 * tp + fp + fn + SMOOTH)
    dice_mean = jnp.mean(dc)
    return WEIGHT_BCE * bce_mean + WEIGHT_DICE * (-dice_mean)


def _reference(logits, target):
    # pure-JAX reference of the PyTorch module for a sanity check
    x = logits.astype(jnp.float32)
    y = target.astype(jnp.float32)
    bce = jnp.mean(jnp.maximum(x, 0.0) - x * y + jnp.log1p(jnp.exp(-jnp.abs(x))))
    s = jax.nn.sigmoid(x)
    axes = (0, 2, 3)
    tp = jnp.sum((s * y) ** 2, axis=axes)
    fp = jnp.sum((s * (1.0 - y)) ** 2, axis=axes)
    fn = jnp.sum(((1.0 - s) * y) ** 2, axis=axes)
    dc = (2.0 * tp + SMOOTH) / (2.0 * tp + fp + fn + SMOOTH)
    return WEIGHT_BCE * bce + WEIGHT_DICE * (-jnp.mean(dc))


if __name__ == "__main__":
    key = jax.random.PRNGKey(0)
    k1, k2 = jax.random.split(key)
    B, C, H, W = 2, 4, 16, 16
    logits = jax.random.normal(k1, (B, C, H, W), dtype=jnp.float32)
    target = jax.random.bernoulli(k2, p=0.3, shape=(B, C, H, W)).astype(jnp.float32)

    loss = jax.block_until_ready(jax.jit(bce_and_dice)(logits, target))
    ref = jax.block_until_ready(_reference(logits, target))
    # approx reciprocal (EUP) and -30 logit pad in the kernel: loosen from 1e-5.
    assert jnp.allclose(loss, ref, rtol=5e-3, atol=5e-3), (loss, ref)
    print("KERNEL_OK")
</pallas_src>

<mosaic_0001>
module attributes {stable_mosaic.version = 11 : i64} {
  func.func @_kernel(%arg0: i32, %arg1: i32, %arg2: i32, %arg3: memref<1x4x1x8x128xf32, #tpu.memory_space<vmem>>, %arg4: memref<1x4x1x8x128xf32, #tpu.memory_space<vmem>>, %arg5: memref<1x1x4x4x8x128xf32, #tpu.memory_space<vmem>>) attributes {dimension_semantics = [#tpu.dimension_semantics<parallel>, #tpu.dimension_semantics<parallel>, #tpu.dimension_semantics<arbitrary>], iteration_bounds = array<i64: 2, 1, 1>, scalar_prefetch = 0 : i64, scratch_operands = 0 : i64, tpu.core_type = #tpu.core_type<tc>, window_params = [{transform_indices = @transform_0, window_bounds = array<i64: 1, 4, 1, 8, 128>}, {transform_indices = @transform_1, window_bounds = array<i64: 1, 4, 1, 8, 128>}, {transform_indices = @transform_2, window_bounds = array<i64: 1, 1, 4, 4, 8, 128>}]} {
    %c0_i32 = arith.constant 0 : i32
    %0 = arith.cmpi eq, %arg2, %c0_i32 : i32
    %1 = arith.extui %0 : i1 to i32
    %c0_i32_0 = arith.constant 0 : i32
    %2 = arith.cmpi ne, %1, %c0_i32_0 : i32
    scf.if %2 {
      %cst_62 = arith.constant 0.000000e+00 : f32
      %58 = vector.broadcast %cst_62 : f32 to vector<4x4x8x128xf32>
      %c0_63 = arith.constant 0 : index
      %c0_64 = arith.constant 0 : index
      %c0_65 = arith.constant 0 : index
      %c0_66 = arith.constant 0 : index
      %c0_67 = arith.constant 0 : index
      %c0_68 = arith.constant 0 : index
      %59 = vector.load %arg5[%c0_63, %c0_64, %c0_65, %c0_66, %c0_67, %c0_68] : memref<1x1x4x4x8x128xf32, #tpu.memory_space<vmem>>, vector<1x1x4x4x8x128xf32>
      %60 = vector.shape_cast %59 : vector<1x1x4x4x8x128xf32> to vector<4x4x8x128xf32>
      %61 = vector.shape_cast %58 : vector<4x4x8x128xf32> to vector<1x1x4x4x8x128xf32>
      tpu.vector_store %arg5[%c0_63, %c0_64, %c0_65, %c0_66, %c0_67, %c0_68], %61 {strides = array<i32>} : memref<1x1x4x4x8x128xf32, #tpu.memory_space<vmem>>, vector<1x1x4x4x8x128xf32>,
    } else {
    }
    %c0 = arith.constant 0 : index
    %c0_1 = arith.constant 0 : index
    %c0_2 = arith.constant 0 : index
    %c0_3 = arith.constant 0 : index
    %c0_4 = arith.constant 0 : index
    %3 = vector.load %arg3[%c0, %c0_1, %c0_2, %c0_3, %c0_4] : memref<1x4x1x8x128xf32, #tpu.memory_space<vmem>>, vector<1x4x1x8x128xf32>
    %4 = vector.shape_cast %3 : vector<1x4x1x8x128xf32> to vector<4x1x8x128xf32>
    %c0_5 = arith.constant 0 : index
    %c0_6 = arith.constant 0 : index
    %c0_7 = arith.constant 0 : index
    %c0_8 = arith.constant 0 : index
    %c0_9 = arith.constant 0 : index
    %5 = vector.load %arg4[%c0_5, %c0_6, %c0_7, %c0_8, %c0_9] : memref<1x4x1x8x128xf32, #tpu.memory_space<vmem>>, vector<1x4x1x8x128xf32>
    %6 = vector.shape_cast %5 : vector<1x4x1x8x128xf32> to vector<4x1x8x128xf32>
    %7 = math.absf %4 : vector<4x1x8x128xf32>
    %cst = arith.constant 0.000000e+00 : f32
    %8 = vector.broadcast %cst : f32 to vector<4x1x8x128xf32>
    %9 = arith.subf %8, %7 : vector<4x1x8x128xf32>
    %10 = math.exp %9 : vector<4x1x8x128xf32>
    %cst_10 = arith.constant 0.000000e+00 : f32
    %11 = vector.broadcast %cst_10 : f32 to vector<4x1x8x128xf32>
    %12 = arith.maximumf %4, %11 : vector<4x1x8x128xf32>
    %13 = arith.mulf %4, %6 : vector<4x1x8x128xf32>
    %14 = arith.subf %12, %13 : vector<4x1x8x128xf32>
    %15 = math.log1p %10 : vector<4x1x8x128xf32>
    %16 = arith.addf %14, %15 : vector<4x1x8x128xf32>
    %cst_11 = arith.constant 1.000000e+00 : f32
    %17 = vector.broadcast %cst_11 : f32 to vector<4x1x8x128xf32>
    %18 = arith.addf %17, %10 : vector<4x1x8x128xf32>
    %19 = tpu.reciprocal %18 {approx = true} : vector<4x1x8x128xf32> -> vector<4x1x8x128xf32>
    %cst_12 = arith.constant 0.000000e+00 : f32
    %20 = vector.broadcast %cst_12 : f32 to vector<4x1x8x128xf32>
    %21 = arith.cmpf oge, %4, %20 : vector<4x1x8x128xf32>
    %22 = arith.mulf %10, %19 : vector<4x1x8x128xf32>
    %23 = arith.select %21, %19, %22 : vector<4x1x8x128xi1>, vector<4x1x8x128xf32>
    %24 = arith.mulf %23, %6 : vector<4x1x8x128xf32>
    %25 = arith.mulf %24, %24 : vector<4x1x8x128xf32>
    %26 = arith.subf %23, %24 : vector<4x1x8x128xf32>
    %27 = arith.mulf %26, %26 : vector<4x1x8x128xf32>
    %28 = arith.subf %6, %24 : vector<4x1x8x128xf32>
    %29 = arith.mulf %28, %28 : vector<4x1x8x128xf32>
    %c0_13 = arith.constant 0 : index
    %c0_14 = arith.constant 0 : index
    %c0_15 = arith.constant 0 : index
    %c0_16 = arith.constant 0 : index
    %c0_17 = arith.constant 0 : index
    %c0_18 = arith.constant 0 : index
    %30 = vector.load %arg5[%c0_13, %c0_14, %c0_15, %c0_16, %c0_17, %c0_18] : memref<1x1x4x4x8x128xf32, #tpu.memory_space<vmem>>, vector<1x1x1x4x8x128xf32>
    %31 = vector.shape_cast %30 : vector<1x1x1x4x8x128xf32> to vector<4x8x128xf32>
    %cst_19 = arith.constant dense<0.000000e+00> : vector<4x8x128xf32>
    %32 = vector.multi_reduction <add>, %16, %cst_19 [1] : vector<4x1x8x128xf32> to vector<4x8x128xf32>
    %33 = arith.addf %31, %32 : vector<4x8x128xf32>
    %c0_20 = arith.constant 0 : index
    %c0_21 = arith.constant 0 : index
    %c0_22 = arith.constant 0 : index
    %c0_23 = arith.constant 0 : index
    %c0_24 = arith.constant 0 : index
    %c0_25 = arith.constant 0 : index
    %34 = vector.load %arg5[%c0_20, %c0_21, %c0_22, %c0_23, %c0_24, %c0_25] : memref<1x1x4x4x8x128xf32, #tpu.memory_space<vmem>>, vector<1x1x1x4x8x128xf32>
    %35 = vector.shape_cast %34 : vector<1x1x1x4x8x128xf32> to vector<4x8x128xf32>
    %36 = vector.shape_cast %33 : vector<4x8x128xf32> to vector<1x1x1x4x8x128xf32>
    tpu.vector_store %arg5[%c0_20, %c0_21, %c0_22, %c0_23, %c0_24, %c0_25], %36 {strides = array<i32>} : memref<1x1x4x4x8x128xf32, #tpu.memory_space<vmem>>, vector<1x1x1x4x8x128xf32>,
    %c0_26 = arith.constant 0 : index
    %c0_27 = arith.constant 0 : index
    %c1 = arith.constant 1 : index
    %c0_28 = arith.constant 0 : index
    %c0_29 = arith.constant 0 : index
    %c0_30 = arith.constant 0 : index
    %37 = vector.load %arg5[%c0_26, %c0_27, %c1, %c0_28, %c0_29, %c0_30] : memref<1x1x4x4x8x128xf32, #tpu.memory_space<vmem>>, vector<1x1x1x4x8x128xf32>
    %38 = vector.shape_cast %37 : vector<1x1x1x4x8x128xf32> to vector<4x8x128xf32>
    %cst_31 = arith.constant dense<0.000000e+00> : vector<4x8x128xf32>
    %39 = vector.multi_reduction <add>, %25, %cst_31 [1] : vector<4x1x8x128xf32> to vector<4x8x128xf32>
    %40 = arith.addf %38, %39 : vector<4x8x128xf32>
    %c0_32 = arith.constant 0 : index
    %c0_33 = arith.constant 0 : index
    %c1_34 = arith.constant 1 : index
    %c0_35 = arith.constant 0 : index
    %c0_36 = arith.constant 0 : index
    %c0_37 = arith.constant 0 : index
    %41 = vector.load %arg5[%c0_32, %c0_33, %c1_34, %c0_35, %c0_36, %c0_37] : memref<1x1x4x4x8x128xf32, #tpu.memory_space<vmem>>, vector<1x1x1x4x8x128xf32>
    %42 = vector.shape_cast %41 : vector<1x1x1x4x8x128xf32> to vector<4x8x128xf32>
    %43 = vector.shape_cast %40 : vector<4x8x128xf32> to vector<1x1x1x4x8x128xf32>
    tpu.vector_store %arg5[%c0_32, %c0_33, %c1_34, %c0_35, %c0_36, %c0_37], %43 {strides = array<i32>} : memref<1x1x4x4x8x128xf32, #tpu.memory_space<vmem>>, vector<1x1x1x4x8x128xf32>,
    %c0_38 = arith.constant 0 : index
    %c0_39 = arith.constant 0 : index
    %c2 = arith.constant 2 : index
    %c0_40 = arith.constant 0 : index
    %c0_41 = arith.constant 0 : index
    %c0_42 = arith.constant 0 : index
    %44 = vector.load %arg5[%c0_38, %c0_39, %c2, %c0_40, %c0_41, %c0_42] : memref<1x1x4x4x8x128xf32, #tpu.memory_space<vmem>>, vector<1x1x1x4x8x128xf32>
    %45 = vector.shape_cast %44 : vector<1x1x1x4x8x128xf32> to vector<4x8x128xf32>
    %cst_43 = arith.constant dense<0.000000e+00> : vector<4x8x128xf32>
    %46 = vector.multi_reduction <add>, %27, %cst_43 [1] : vector<4x1x8x128xf32> to vector<4x8x128xf32>
    %47 = arith.addf %45, %46 : vector<4x8x128xf32>
    %c0_44 = arith.constant 0 : index
    %c0_45 = arith.constant 0 : index
    %c2_46 = arith.constant 2 : index
    %c0_47 = arith.constant 0 : index
    %c0_48 = arith.constant 0 : index
    %c0_49 = arith.constant 0 : index
    %48 = vector.load %arg5[%c0_44, %c0_45, %c2_46, %c0_47, %c0_48, %c0_49] : memref<1x1x4x4x8x128xf32, #tpu.memory_space<vmem>>, vector<1x1x1x4x8x128xf32>
    %49 = vector.shape_cast %48 : vector<1x1x1x4x8x128xf32> to vector<4x8x128xf32>
    %50 = vector.shape_cast %47 : vector<4x8x128xf32> to vector<1x1x1x4x8x128xf32>
    tpu.vector_store %arg5[%c0_44, %c0_45, %c2_46, %c0_47, %c0_48, %c0_49], %50 {strides = array<i32>} : memref<1x1x4x4x8x128xf32, #tpu.memory_space<vmem>>, vector<1x1x1x4x8x128xf32>,
    %c0_50 = arith.constant 0 : index
    %c0_51 = arith.constant 0 : index
    %c3 = arith.constant 3 : index
    %c0_52 = arith.constant 0 : index
    %c0_53 = arith.constant 0 : index
    %c0_54 = arith.constant 0 : index
    %51 = vector.load %arg5[%c0_50, %c0_51, %c3, %c0_52, %c0_53, %c0_54] : memref<1x1x4x4x8x128xf32, #tpu.memory_space<vmem>>, vector<1x1x1x4x8x128xf32>
    %52 = vector.shape_cast %51 : vector<1x1x1x4x8x128xf32> to vector<4x8x128xf32>
    %cst_55 = arith.constant dense<0.000000e+00> : vector<4x8x128xf32>
    %53 = vector.multi_reduction <add>, %29, %cst_55 [1] : vector<4x1x8x128xf32> to vector<4x8x128xf32>
    %54 = arith.addf %52, %53 : vector<4x8x128xf32>
    %c0_56 = arith.constant 0 : index
    %c0_57 = arith.constant 0 : index
    %c3_58 = arith.constant 3 : index
    %c0_59 = arith.constant 0 : index
    %c0_60 = arith.constant 0 : index
    %c0_61 = arith.constant 0 : index
    %55 = vector.load %arg5[%c0_56, %c0_57, %c3_58, %c0_59, %c0_60, %c0_61] : memref<1x1x4x4x8x128xf32, #tpu.memory_space<vmem>>, vector<1x1x1x4x8x128xf32>
    %56 = vector.shape_cast %55 : vector<1x1x1x4x8x128xf32> to vector<4x8x128xf32>
    %57 = vector.shape_cast %54 : vector<4x8x128xf32> to vector<1x1x1x4x8x128xf32>
    tpu.vector_store %arg5[%c0_56, %c0_57, %c3_58, %c0_59, %c0_60, %c0_61], %57 {strides = array<i32>} : memref<1x1x4x4x8x128xf32, #tpu.memory_space<vmem>>, vector<1x1x1x4x8x128xf32>,
    return
  }
  func.func @transform_0(%arg0: i32, %arg1: i32, %arg2: i32) -> (i32, i32, i32, i32, i32) {
    %c1_i32 = arith.constant 1 : i32
    %0 = arith.muli %arg1, %c1_i32 : i32
    %1 = arith.addi %0, %arg2 : i32
    %c0_i32 = arith.constant 0 : i32
    %c0_i32_0 = arith.constant 0 : i32
    %c0_i32_1 = arith.constant 0 : i32
    %c0_i32_2 = arith.constant 0 : i32
    return %arg0, %c0_i32, %1, %c0_i32_0, %c0_i32_1 : i32, i32, i32, i32, i32
  }
  func.func @transform_1(%arg0: i32, %arg1: i32, %arg2: i32) -> (i32, i32, i32, i32, i32) {
    %c1_i32 = arith.constant 1 : i32
    %0 = arith.muli %arg1, %c1_i32 : i32
    %1 = arith.addi %0, %arg2 : i32
    %c0_i32 = arith.constant 0 : i32
    %c0_i32_0 = arith.constant 0 : i32
    %c0_i32_1 = arith.constant 0 : i32
    %c0_i32_2 = arith.constant 0 : i32
    return %arg0, %c0_i32, %1, %c0_i32_0, %c0_i32_1 : i32, i32, i32, i32, i32
  }
  func.func @transform_2(%arg0: i32, %arg1: i32, %arg2: i32) -> (i32, i32, i32, i32, i32, i32) {
    %c0_i32 = arith.constant 0 : i32
    %c0_i32_0 = arith.constant 0 : i32
    %c0_i32_1 = arith.constant 0 : i32
    %c0_i32_2 = arith.constant 0 : i32
    %c0_i32_3 = arith.constant 0 : i32
    return %arg0, %arg1, %c0_i32, %c0_i32_0, %c0_i32_1, %c0_i32_2 : i32, i32, i32, i32, i32, i32
  }
}

</mosaic_0001>

<bundles_post_ra>
// kernel: bce_and_dice.1
= control target key start
LH: loop header
LB: loop body
LE: loop exit
PB: predicated region body
PF: predicated region fallthrough
CT: control target
= control target key end

     0   :  { %s674_s9 = smov 0   ;;  %s676_s10 = smov 0   ;;  %s829_s0 = inlined_call_operand.vmem [shape: f32[2,4,1,8,128], index: 0, kind: input, shape index: {}]   ;;  %s830_s1 = inlined_call_operand.vmem [shape: f32[2,4,1,8,128], index: 1, kind: input, shape index: {}]   ;;  %s831_s2 = inlined_call_operand.vmem [shape: f32[2,1,4,4,8,128], index: 2, kind: output, shape index: {}]  }
   0x1   :  { %s678_s11 = smov 0  }
   0x2 LB: > { %s31_s12 = sadd.s32 1, %s653_s10  ;;  %p550_p0 = scmp.ge.s32.totalorder %s657_s11, 1  ;;  %s657_s11 = sphi %s678_s11, %s12_s11   ;;  %s653_s10 = sphi %s676_s10, %s841_s10   ;;  %s649_s9 = sphi %s674_s9, %s840_s9  }
   0x3   : > { %p33_p1 = scmp.ge.s32.totalorder %s31_s12, 2  ;;  %p161_p2 = scmp.lt.s32.totalorder %s657_s11, 3 }
   0x5   : > { %s843_s12 = smov (%p33_p1, %s31_s12), 0  ;;  %p162_p3 = pnand %p550_p0, %p161_p2 }
   0x6   : > { %p201_p4 = scmp.lt.s32.totalorder (!%p162_p3), %s649_s9, 1 }
   0x7   : > { %165 = sbr.rel (%p162_p3) target bundleno = 65 (0x41), region = 28 }
   0xe   : > { %s845_s9 = smov (!%p201_p4, %s649_s9), 1 }
   0xf   : > { %s583_s13 = sshll.u32 %s845_s9, 5  ;;  %s585_s20 = sshll.u32 %s845_s9, 7 }
  0x10   : > { %s208_s16 = scalar_lea.vmem %s829_s0, %s583_s13  ;;  %s218_s19 = scalar_lea.vmem %s830_s1, %s583_s13 }
  0x11   : > { %v698_v0 = vld [vmem:[%s208_s16] sm:$0xff]  ;;  %v700_v1 = vld [vmem:[%s208_s16 + $0x8] sm:$0xff]  ;;  %v702_v2 = vld [vmem:[%s208_s16 + $0x10] sm:$0xff]  ;;  %s779_s23 = scalar_lea.vmem %s831_s2, %s585_s20 }
  0x12   : > { %v257_v3 = vand.u32 2147483647, %v698_v0  ;;  %v258_v4 = vand.u32 2147483647, %v700_v1  ;;  %v259_v5 = vand.u32 2147483647, %v702_v2 }
  0x13   : > { %v707_v6 = vld [vmem:[%s208_s16 + $0x18] sm:$0xff]  ;;  %v720_v22 = vld [vmem:[%s218_s19] sm:$0xff]  ;;  %v722_v24 = vld [vmem:[%s218_s19 + $0x8] sm:$0xff]  ;;  %v273_v26 = vmax.f32 %v698_v0, 0.0  ;;  %v274_v31 = vmax.f32 %v700_v1, 0.0  ;;  %v275_v33 = vmax.f32 %v702_v2, 0.0 }
  0x14   : > { %v261_v7 = vsub.f32 0.0, %v257_v3  ;;  %v260_v8 = vand.u32 2147483647, %v707_v6  ;;  %v262_v9 = vsub.f32 0.0, %v258_v4  ;;  %v263_v10 = vsub.f32 0.0, %v259_v5  ;;  %v726_v27 = vld [vmem:[%s218_s19 + $0x10] sm:$0xff] }
  0x15   : > { %v277_v28 = vmul.f32 %v720_v22, %v698_v0  ;;  %v278_v32 = vmul.f32 %v722_v24, %v700_v1  ;;  %v279_v35 = vmul.f32 %v726_v27, %v702_v2  ;;  %v739_v37 = vld [vmem:[%s218_s19 + $0x18] sm:$0xff]  ;;  %v276_v44 = vmax.f32 %v707_v6, 0.0 }
  0x16   : > { %v265_v11 = vmul.f32 1.442695, %v261_v7  ;;  %v264_v12 = vsub.f32 0.0, %v260_v8  ;;  %v267_v13 = vmul.f32 1.442695, %v262_v9  ;;  %v280_v45 = vmul.f32 %v739_v37, %v707_v6 }
  0x17   : > { %v269_v14 = vmul.f32 1.442695, %v263_v10  ;;  %v281_v39 = vsub.f32 %v273_v26, %v277_v28  ;;  %v282_v42 = vsub.f32 %v274_v31, %v278_v32  ;;  %v283_v47 = vsub.f32 %v275_v33, %v279_v35 }
  0x18   : > { %611 = vpow2.f32 %v265_v11  ;;  %v271_v15 = vmul.f32 1.442695, %v264_v12  ;;  %vm333_vm1 = vcmp.ge.f32.partialorder %v698_v0, 0.0  ;;  %vm334_vm2 = vcmp.ge.f32.partialorder %v700_v1, 0.0 }
  0x19   : > { %613 = vpow2.f32 %v267_v13  ;;  %vm335_vm3 = vcmp.ge.f32.partialorder %v702_v2, 0.0  ;;  %v284_v59 = vsub.f32 %v276_v44, %v280_v45  ;;  %vm336_vm5 = vcmp.ge.f32.partialorder %v707_v6, 0.0 }
  0x1a   : > { %615 = vpow2.f32 %v269_v14 }
  0x1b   : > { %617 = vpow2.f32 %v271_v15 }
  0x22   : > { %v612_v16 = vpop.eup %611 }
  0x23   : > { %v713_v17 = vpop.eup %613  ;;  %v285_v18 = vadd.f32 1.0, %v612_v16  ;;  %v288_v23 = vmul.f32 -0.5, %v612_v16  ;;  %v291_v38 = vand.u32 2147483647, %v612_v16 }
  0x24   : > { %v715_v19 = vpop.eup %615  ;;  %v294_v20 = vadd.f32 1.0, %v713_v17  ;;  %v297_v29 = vmul.f32 -0.5, %v713_v17  ;;  %v300_v43 = vand.u32 2147483647, %v713_v17 }
  0x25   : > { %v718_v21 = vpop.eup %617  ;;  %619 = vlog2.f32 %v285_v18  ;;  %v303_v25 = vadd.f32 1.0, %v715_v19  ;;  %v289_v34 = vadd.f32 1.0, %v288_v23  ;;  %v306_v36 = vmul.f32 -0.5, %v715_v19 }
  0x26   : > { %621 = vrcp.f32 %v285_v18  ;;  %v312_v30 = vadd.f32 1.0, %v718_v21  ;;  %v298_v40 = vadd.f32 1.0, %v297_v29  ;;  %v315_v41 = vmul.f32 -0.5, %v718_v21 }
  0x27   : > { %623 = vlog2.f32 %v294_v20  ;;  %v290_v46 = vmul.f32 %v612_v16, %v289_v34  ;;  %v307_v48 = vadd.f32 1.0, %v306_v36  ;;  %v309_v49 = vand.u32 2147483647, %v715_v19 }
  0x28   : > { %625 = vrcp.f32 %v294_v20  ;;  %vm747_vm0 = vcmp.lt.f32.partialorder %v291_v38, 0.0004427343  ;;  %v318_v52 = vand.u32 2147483647, %v718_v21  ;;  %v299_v55 = vmul.f32 %v713_v17, %v298_v40 }
  0x29   : > { %627 = vlog2.f32 %v303_v25  ;;  %v316_v56 = vadd.f32 1.0, %v315_v41  ;;  %vm757_vm4 = vcmp.lt.f32.partialorder %v300_v43, 0.0004427343  ;;  %v308_v3 = vmul.f32 %v715_v19, %v307_v48 }
  0x2a   : > { %629 = vrcp.f32 %v303_v25  ;;  %vm765_vm6 = vcmp.lt.f32.partialorder %v309_v49, 0.0004427343  ;;  %vm769_vm7 = vcmp.lt.f32.partialorder %v318_v52, 0.0004427343 }
  0x2b   : > { %631 = vlog2.f32 %v312_v30  ;;  %v317_v14 = vmul.f32 %v718_v21, %v316_v56 }
  0x2c   : > { %633 = vrcp.f32 %v312_v30 }
  0x2f   : > { %v620_v50 = vpop.eup %619 }
  0x30   : > { %v622_v53 = vpop.eup %621  ;;  %v287_v54 = vmul.f32 0.6931472, %v620_v50 }
  0x31   : > { %v624_v57 = vpop.eup %623  ;;  %v337_v60 = vmul.f32 %v622_v53, %v612_v16 }
  0x32   : > { %v626_v61 = vpop.eup %625  ;;  %v293_v62 = vsel %vm747_vm0, %v290_v46, %v287_v54  ;;  %v296_v63 = vmul.f32 0.6931472, %v624_v57 }
  0x33   : > { %v628_v5 = vpop.eup %627  ;;  %v321_v7 = vadd.f32 %v293_v62, %v281_v39  ;;  %v341_v9 = vsel %vm333_vm1, %v622_v53, %v337_v60  ;;  %v338_v10 = vmul.f32 %v626_v61, %v713_v17 }
  0x34   : > { %v630_v11 = vpop.eup %629  ;;  %v302_v12 = vsel %vm757_vm4, %v299_v55, %v296_v63  ;;  %v305_v13 = vmul.f32 0.6931472, %v628_v5  ;;  %v345_v15 = vmul.f32 %v341_v9, %v720_v22 }
  0x35   : > { %v632_v16 = vpop.eup %631  ;;  %v322_v0 = vadd.f32 %v302_v12, %v282_v42  ;;  %v342_v17 = vsel %vm334_vm2, %v626_v61, %v338_v10  ;;  %v339_v18 = vmul.f32 %v630_v11, %v715_v19  ;;  %381 = vst [vmem:[%s779_s23] sm:$0xff] %v321_v7 }
  0x36   : > { %v634_v20 = vpop.eup %633  ;;  %v311_v23 = vsel %vm765_vm6, %v308_v3, %v305_v13  ;;  %v314_v25 = vmul.f32 0.6931472, %v632_v16  ;;  %v349_v26 = vmul.f32 %v345_v15, %v345_v15  ;;  %v346_v28 = vmul.f32 %v342_v17, %v722_v24 }
  0x37   : > { %v323_v29 = vadd.f32 %v311_v23, %v283_v47  ;;  %v343_v30 = vsel %vm335_vm3, %v630_v11, %v339_v18  ;;  %v340_v1 = vmul.f32 %v634_v20, %v718_v21  ;;  %382 = vst [vmem:[%s779_s23 + $0x8] sm:$0xff] %v322_v0  ;;  %v353_v35 = vsub.f32 %v341_v9, %v345_v15 }
  0x38   : > { %v320_v19 = vsel %vm769_vm7, %v317_v14, %v314_v25  ;;  %v350_v31 = vmul.f32 %v346_v28, %v346_v28  ;;  %v347_v32 = vmul.f32 %v343_v30, %v726_v27  ;;  %561 = vst [vmem:[%s779_s23 + $0x20] sm:$0xff] %v349_v26  ;;  %v354_v21 = vsub.f32 %v342_v17, %v346_v28 }
  0x39   : > { %v324_v33 = vadd.f32 %v320_v19, %v284_v59  ;;  %v344_v34 = vsel %vm336_vm5, %v634_v20, %v340_v1  ;;  %383 = vst [vmem:[%s779_s23 + $0x10] sm:$0xff] %v323_v29  ;;  %v357_v38 = vmul.f32 %v353_v35, %v353_v35  ;;  %v361_v40 = vsub.f32 %v720_v22, %v345_v15 }
  0x3a   : > { %v351_v2 = vmul.f32 %v347_v32, %v347_v32  ;;  %v348_v36 = vmul.f32 %v344_v34, %v739_v37  ;;  %v355_v39 = vsub.f32 %v343_v30, %v347_v32  ;;  %562 = vst [vmem:[%s779_s23 + $0x28] sm:$0xff] %v350_v31  ;;  %v358_v6 = vmul.f32 %v354_v21, %v354_v21 }
  0x3b   : > { %384 = vst [vmem:[%s779_s23 + $0x18] sm:$0xff] %v324_v33  ;;  %v365_v44 = vmul.f32 %v361_v40, %v361_v40  ;;  %v362_v45 = vsub.f32 %v722_v24, %v346_v28  ;;  %v363_v22 = vsub.f32 %v726_v27, %v347_v32  ;;  %569 = vst [vmem:[%s779_s23 + $0x40] sm:$0xff] %v357_v38 }
  0x3c   : > { %v352_v41 = vmul.f32 %v348_v36, %v348_v36  ;;  %v356_v42 = vsub.f32 %v344_v34, %v348_v36  ;;  %v359_v43 = vmul.f32 %v355_v39, %v355_v39  ;;  %563 = vst [vmem:[%s779_s23 + $0x30] sm:$0xff] %v351_v2  ;;  %v364_v48 = vsub.f32 %v739_v37, %v348_v36 }
  0x3d   : > { %v366_v47 = vmul.f32 %v362_v45, %v362_v45  ;;  %570 = vst [vmem:[%s779_s23 + $0x48] sm:$0xff] %v358_v6  ;;  %v367_v49 = vmul.f32 %v363_v22, %v363_v22  ;;  %577 = vst [vmem:[%s779_s23 + $0x60] sm:$0xff] %v365_v44 }
  0x3e   : > { %v360_v46 = vmul.f32 %v356_v42, %v356_v42  ;;  %564 = vst [vmem:[%s779_s23 + $0x38] sm:$0xff] %v352_v41  ;;  %571 = vst [vmem:[%s779_s23 + $0x50] sm:$0xff] %v359_v43  ;;  %v368_v50 = vmul.f32 %v364_v48, %v364_v48 }
  0x3f   : > { %578 = vst [vmem:[%s779_s23 + $0x68] sm:$0xff] %v366_v47  ;;  %579 = vst [vmem:[%s779_s23 + $0x70] sm:$0xff] %v367_v49 }
  0x40   : > { %572 = vst [vmem:[%s779_s23 + $0x58] sm:$0xff] %v360_v46  ;;  %580 = vst [vmem:[%s779_s23 + $0x78] sm:$0xff] %v368_v50 }
  0x41 PF: > { %s12_s11 = sadd.s32 1, %s657_s11   ;;  %s840_s9 = smov %s653_s10 }
  0x42   : > { %p9_p5 = scmp.ge.s32.totalorder %s12_s11, 4   ;;  %s841_s10 = smov %s843_s12 }
  0x44   :  { %11 = sbr.rel (!%p9_p5) target bundleno = 2 (0x2), region = 68 }

</bundles_post_ra>
